<compile_context>
chip_gen: v5e
topology: v5e:2x2
jax: 0.10.0
libtpu: 0.0.40
codegen_flags: <defaults>
</compile_context>

<pallas_src>
import functools

import jax
import jax.numpy as jnp
from jax import lax
from jax.experimental import pallas as pl
from jax.experimental.pallas import tpu as pltpu


LN_EPS = 1e-5   # torch.nn.LayerNorm default eps
LANE = 128
SUBLANE = 8


def _round_up(x, m):
    return ((x + m - 1) // m) * m


# ---------------------------------------------------------------------------
# Kernel
# ---------------------------------------------------------------------------
def style_modulator_kernel(
    x_ref,                      # [tb, C_pad + S_pad] f32  ([content | style])
    w1_ref, b1_ref,             # [(C_pad+S_pad), 3*H_pad], [1, 3*H_pad]
    w2_ref, b2_ref,             # [H_pad, H_pad],           [1, H_pad]
    w3_ref, b3_ref,             # [3*H_pad, 3*C_pad],       [1, 3*C_pad]
    out_ref,                    # [tb, C_pad]
    *, c_pad, h_pad, true_c, mxu_dtype,
):
    x = x_ref[...].astype(jnp.float32)           # [tb, C_pad + S_pad]
    content = x[:, :c_pad]                        # [tb, C_pad], padded lanes are 0

    # ---- LayerNorm over the true content_dim (no affine, eps = 1e-5).
    #      Padded lanes are zero -> sums already exclude them; divide by the
    #      true C and use E[x^2] - mean^2 so no lane mask is needed. ----
    inv_c = jnp.float32(1.0 / true_c)
    mean = jnp.sum(content, axis=-1, keepdims=True) * inv_c
    ex2 = jnp.sum(content * content, axis=-1, keepdims=True) * inv_c
    var = jnp.maximum(ex2 - mean * mean, 0.0)
    normalized = (content - mean) * lax.rsqrt(var + LN_EPS)

    # ---- Stage 1: one MXU push for gamma-hidden, beta-hidden and the fused
    #      content/style projection: [content|style] @ W1 + b1. ----
    x1 = jnp.dot(x.astype(mxu_dtype), w1_ref[...],
                 preferred_element_type=jnp.float32) + b1_ref[...]
    gb_h = jnp.maximum(x1[:, :2 * h_pad], 0.0)    # relu(gamma_h | beta_h)
    fused = x1[:, 2 * h_pad:]                     # content_proj + style_proj

    # ---- Stage 2: fusion hidden layer. ----
    f_h = jnp.dot(fused.astype(mxu_dtype), w2_ref[...],
                  preferred_element_type=jnp.float32) + b2_ref[...]
    f_h = jnp.maximum(f_h, 0.0)

    # ---- Stage 3: block-diagonal push: [gamma_h|beta_h|f_h] @ W3 + b3
    #      -> [gamma | beta | fused_out]. ----
    h_cat = jnp.concatenate([gb_h, f_h], axis=-1)            # [tb, 3*H_pad]
    x3 = jnp.dot(h_cat.astype(mxu_dtype), w3_ref[...],
                 preferred_element_type=jnp.float32) + b3_ref[...]
    gamma = x3[:, :c_pad]
    beta = x3[:, c_pad:2 * c_pad]
    fused_out = x3[:, 2 * c_pad:]

    # ---- FiLM + residual fusion, lane-dense (C_pad = multiple of 128) store.
    out_ref[...] = (gamma * normalized + beta + fused_out).astype(out_ref.dtype)


# ---------------------------------------------------------------------------
# Parameter packing (done once, outside the kernel)
# ---------------------------------------------------------------------------
def pack_params(params, content_dim, style_dim, hidden_dim,
                mxu_dtype=jnp.float32):
    """Pack the 16 PyTorch tensors into 3 lane-padded weight slabs + 3 biases."""
    C, S, H = content_dim, style_dim, hidden_dim
    C_pad = _round_up(C, LANE)
    S_pad = _round_up(S, LANE)
    H_pad = _round_up(H, LANE)

    # W1: rows = [content_pad | style_pad], cols = [gamma_h | beta_h | proj]
    w1 = jnp.zeros((C_pad + S_pad, 3 * H_pad), jnp.float32)
    w1 = w1.at[C_pad:C_pad + S, 0:H].set(params["gamma1_w"])
    w1 = w1.at[C_pad:C_pad + S, H_pad:H_pad + H].set(params["beta1_w"])
    w1 = w1.at[0:C, 2 * H_pad:2 * H_pad + H].set(params["content_proj_w"])
    w1 = w1.at[C_pad:C_pad + S, 2 * H_pad:2 * H_pad + H].set(params["style_proj_w"])

    b1 = jnp.zeros((1, 3 * H_pad), jnp.float32)
    b1 = b1.at[:, 0:H].set(params["gamma1_b"])
    b1 = b1.at[:, H_pad:H_pad + H].set(params["beta1_b"])
    b1 = b1.at[:, 2 * H_pad:2 * H_pad + H].set(
        params["content_proj_b"] + params["style_proj_b"])

    w2 = jnp.zeros((H_pad, H_pad), jnp.float32).at[:H, :H].set(params["fusion1_w"])
    b2 = jnp.zeros((1, H_pad), jnp.float32).at[:, :H].set(params["fusion1_b"])

    # W3: block-diagonal, rows = [gamma_h | beta_h | f_h], cols = [gamma|beta|fused]
    w3 = jnp.zeros((3 * H_pad, 3 * C_pad), jnp.float32)
    w3 = w3.at[0:H, 0:C].set(params["gamma2_w"])
    w3 = w3.at[H_pad:H_pad + H, C_pad:C_pad + C].set(params["beta2_w"])
    w3 = w3.at[2 * H_pad:2 * H_pad + H, 2 * C_pad:2 * C_pad + C].set(params["fusion2_w"])

    b3 = jnp.zeros((1, 3 * C_pad), jnp.float32)
    b3 = b3.at[:, 0:C].set(params["gamma2_b"])
    b3 = b3.at[:, C_pad:C_pad + C].set(params["beta2_b"])
    b3 = b3.at[:, 2 * C_pad:2 * C_pad + C].set(params["fusion2_b"])

    return {
        "w1": w1.astype(mxu_dtype), "b1": b1,
        "w2": w2.astype(mxu_dtype), "b2": b2,
        "w3": w3.astype(mxu_dtype), "b3": b3,
    }


# ---------------------------------------------------------------------------
# Forward wrapper
# ---------------------------------------------------------------------------
def style_modulator_forward(content, style, packed, *, tb=None):
    """content: [B, C], style: [B, S] -> [B, C]."""
    B, C = content.shape
    B2, S = style.shape
    assert B2 == B

    w1, b1 = packed["w1"], packed["b1"]
    w2, b2 = packed["w2"], packed["b2"]
    w3, b3 = packed["w3"], packed["b3"]

    CS_pad = w1.shape[0]
    H_pad = w2.shape[0]
    C_pad = w3.shape[1] // 3
    mxu_dtype = w1.dtype

    # Batch tile: >= 8 sublanes, capped so each block (plus double buffering of
    # the 7 inputs) stays far below v7x's 64 MiB VMEM while amortizing the
    # ~0.35 us/step grid overhead and enabling multi-step pipelining.
    if tb is None:
        tb = min(256, _round_up(B, SUBLANE))
    tb = max(SUBLANE, _round_up(tb, SUBLANE))
    B_pad = _round_up(B, tb)

    # Zero-pad activations to lane-dense widths and concatenate once (kept f32
    # so the in-kernel LayerNorm statistics stay full precision).
    x_cat = jnp.zeros((B_pad, CS_pad), jnp.float32)
    x_cat = x_cat.at[:B, :C].set(content.astype(jnp.float32))
    x_cat = x_cat.at[:B, C_pad:C_pad + S].set(style.astype(jnp.float32))

    grid = (B_pad // tb,)

    kernel = functools.partial(
        style_modulator_kernel,
        c_pad=C_pad, h_pad=H_pad, true_c=C, mxu_dtype=mxu_dtype)

    batch_spec = lambda width: pl.BlockSpec((tb, width), lambda i: (i, 0))
    weight_spec = lambda arr: pl.BlockSpec(arr.shape, lambda i: (0, 0))

    flops = 2 * B_pad * (CS_pad * 3 * H_pad + H_pad * H_pad + 3 * H_pad * 3 * C_pad)
    bytes_accessed = (
        x_cat.size * x_cat.dtype.itemsize
        + B_pad * C_pad * 4
        + sum(a.size * a.dtype.itemsize for a in (w1, b1, w2, b2, w3, b3)))

    out = pl.pallas_call(
        kernel,
        out_shape=jax.ShapeDtypeStruct((B_pad, C_pad), content.dtype),
        grid_spec=pltpu.PrefetchScalarGridSpec(
            num_scalar_prefetch=0,
            grid=grid,
            in_specs=[batch_spec(CS_pad),
                      weight_spec(w1), weight_spec(b1),
                      weight_spec(w2), weight_spec(b2),
                      weight_spec(w3), weight_spec(b3)],
            out_specs=batch_spec(C_pad),
        ),
        compiler_params=pltpu.CompilerParams(
            dimension_semantics=("parallel",),
        ),
        cost_estimate=pl.CostEstimate(
            flops=flops, transcendentals=B_pad, bytes_accessed=bytes_accessed),
    )(x_cat, w1, b1, w2, b2, w3, b3)

    return out[:B, :C]


# ---------------------------------------------------------------------------
# Synthetic parameters + pure-JAX reference (mirrors the PyTorch module)
# ---------------------------------------------------------------------------
def init_params(key, content_dim, style_dim, hidden_dim):
    def linear(k, fan_in, fan_out):
        kw, kb = jax.random.split(k)
        scale = 1.0 / jnp.sqrt(jnp.float32(fan_in))
        w = jax.random.uniform(kw, (fan_in, fan_out), jnp.float32, -scale, scale)
        b = jax.random.uniform(kb, (1, fan_out), jnp.float32, -scale, scale)
        return w, b

    keys = jax.random.split(key, 8)
    p = {}
    p["content_proj_w"], p["content_proj_b"] = linear(keys[0], content_dim, hidden_dim)
    p["style_proj_w"], p["style_proj_b"] = linear(keys[1], style_dim, hidden_dim)
    p["gamma1_w"], p["gamma1_b"] = linear(keys[2], style_dim, hidden_dim)
    p["gamma2_w"], p["gamma2_b"] = linear(keys[3], hidden_dim, content_dim)
    p["beta1_w"], p["beta1_b"] = linear(keys[4], style_dim, hidden_dim)
    p["beta2_w"], p["beta2_b"] = linear(keys[5], hidden_dim, content_dim)
    p["fusion1_w"], p["fusion1_b"] = linear(keys[6], hidden_dim, hidden_dim)
    p["fusion2_w"], p["fusion2_b"] = linear(keys[7], hidden_dim, content_dim)
    return p


def reference_forward(content, style, p):
    relu = lambda x: jnp.maximum(x, 0.0)
    gamma = relu(style @ p["gamma1_w"] + p["gamma1_b"]) @ p["gamma2_w"] + p["gamma2_b"]
    beta = relu(style @ p["beta1_w"] + p["beta1_b"]) @ p["beta2_w"] + p["beta2_b"]
    mean = jnp.mean(content, axis=-1, keepdims=True)
    var = jnp.mean((content - mean) ** 2, axis=-1, keepdims=True)
    normalized = (content - mean) / jnp.sqrt(var + LN_EPS)
    modulated = gamma * normalized + beta
    fused = (content @ p["content_proj_w"] + p["content_proj_b"]
             + style @ p["style_proj_w"] + p["style_proj_b"])
    fused = relu(fused @ p["fusion1_w"] + p["fusion1_b"]) @ p["fusion2_w"] + p["fusion2_b"]
    return modulated + fused


if __name__ == "__main__":
    batch = 12            # deliberately NOT a multiple of the batch tile
    content_dim = 32
    style_dim = 16
    hidden_dim = 64

    key = jax.random.PRNGKey(0)
    k_params, k_content, k_style = jax.random.split(key, 3)

    params = init_params(k_params, content_dim, style_dim, hidden_dim)
    content = jax.random.normal(k_content, (batch, content_dim), jnp.float32)
    style = jax.random.normal(k_style, (batch, style_dim), jnp.float32)

    ref = reference_forward(content, style, params)

    # f32 MXU path; tb=8 forces a 2-step grid (exercises pipelining + the
    # batch-padding path: 12 rows -> 16).
    packed_f32 = pack_params(params, content_dim, style_dim, hidden_dim, jnp.float32)
    out_f32 = jax.block_until_ready(
        style_modulator_forward(content, style, packed_f32, tb=8))
    assert out_f32.shape == (batch, content_dim)
    assert jnp.allclose(out_f32, ref, atol=1e-4, rtol=1e-4), "f32 kernel mismatch"

    # bf16 MXU path (throughput option for v6e/v7x); epilogue stays f32.
    packed_bf16 = pack_params(params, content_dim, style_dim, hidden_dim, jnp.bfloat16)
    out_bf16 = jax.block_until_ready(
        style_modulator_forward(content, style, packed_bf16))
    assert out_bf16.shape == (batch, content_dim)
    assert jnp.allclose(out_bf16, ref, atol=0.25, rtol=0.1), "bf16 kernel mismatch"

    print("KERNEL_OK")
</pallas_src>

<mosaic_0001>
module attributes {stable_mosaic.version = 11 : i64} {
  func.func @style_modulator_kernel(%arg0: i32, %arg1: memref<8x256xf32, #tpu.memory_space<vmem>>, %arg2: memref<256x384xf32, #tpu.memory_space<vmem>>, %arg3: memref<1x384xf32, #tpu.memory_space<vmem>>, %arg4: memref<128x128xf32, #tpu.memory_space<vmem>>, %arg5: memref<1x128xf32, #tpu.memory_space<vmem>>, %arg6: memref<384x384xf32, #tpu.memory_space<vmem>>, %arg7: memref<1x384xf32, #tpu.memory_space<vmem>>, %arg8: memref<8x128xf32, #tpu.memory_space<vmem>>) attributes {dimension_semantics = [#tpu.dimension_semantics<parallel>], iteration_bounds = array<i64: 2>, scalar_prefetch = 0 : i64, scratch_operands = 0 : i64, tpu.core_type = #tpu.core_type<tc>, window_params = [{transform_indices = @transform_0, window_bounds = array<i64: 8, 256>}, {pipeline_mode = #tpu.pipeline_mode<synchronous>, transform_indices = @transform_1, window_bounds = array<i64: 256, 384>}, {pipeline_mode = #tpu.pipeline_mode<synchronous>, transform_indices = @transform_2, window_bounds = array<i64: 1, 384>}, {pipeline_mode = #tpu.pipeline_mode<synchronous>, transform_indices = @transform_3, window_bounds = array<i64: 128, 128>}, {pipeline_mode = #tpu.pipeline_mode<synchronous>, transform_indices = @transform_4, window_bounds = array<i64: 1, 128>}, {pipeline_mode = #tpu.pipeline_mode<synchronous>, transform_indices = @transform_5, window_bounds = array<i64: 384, 384>}, {pipeline_mode = #tpu.pipeline_mode<synchronous>, transform_indices = @transform_6, window_bounds = array<i64: 1, 384>}, {transform_indices = @transform_7, window_bounds = array<i64: 8, 128>}]} {
    %c0 = arith.constant 0 : index
    %c0_0 = arith.constant 0 : index
    %0 = vector.load %arg1[%c0, %c0_0] : memref<8x256xf32, #tpu.memory_space<vmem>>, vector<8x256xf32>
    %1 = vector.extract_strided_slice %0 {offsets = [0, 0], sizes = [8, 128], strides = [1, 1]} : vector<8x256xf32> to vector<8x128xf32>
    %cst = arith.constant dense<0.000000e+00> : vector<8xf32>
    %2 = vector.multi_reduction <add>, %1, %cst [1] : vector<8x128xf32> to vector<8xf32>
    %3 = vector.shape_cast %2 : vector<8xf32> to vector<8x1xf32>
    %cst_1 = arith.constant 3.125000e-02 : f32
    %4 = vector.broadcast %cst_1 : f32 to vector<8x1xf32>
    %5 = arith.mulf %3, %4 : vector<8x1xf32>
    %6 = arith.mulf %1, %1 : vector<8x128xf32>
    %cst_2 = arith.constant dense<0.000000e+00> : vector<8xf32>
    %7 = vector.multi_reduction <add>, %6, %cst_2 [1] : vector<8x128xf32> to vector<8xf32>
    %8 = vector.shape_cast %7 : vector<8xf32> to vector<8x1xf32>
    %cst_3 = arith.constant 3.125000e-02 : f32
    %9 = vector.broadcast %cst_3 : f32 to vector<8x1xf32>
    %10 = arith.mulf %8, %9 : vector<8x1xf32>
    %11 = arith.mulf %5, %5 : vector<8x1xf32>
    %12 = arith.subf %10, %11 : vector<8x1xf32>
    %cst_4 = arith.constant 0.000000e+00 : f32
    %13 = vector.broadcast %cst_4 : f32 to vector<8x1xf32>
    %14 = arith.maximumf %12, %13 : vector<8x1xf32>
    %15 = vector.broadcast %5 : vector<8x1xf32> to vector<8x128xf32>
    %16 = arith.subf %1, %15 : vector<8x128xf32>
    %cst_5 = arith.constant 9.99999974E-6 : f32
    %17 = vector.broadcast %cst_5 : f32 to vector<8x1xf32>
    %18 = arith.addf %14, %17 : vector<8x1xf32>
    %19 = math.rsqrt %18 : vector<8x1xf32>
    %20 = vector.broadcast %19 : vector<8x1xf32> to vector<8x128xf32>
    %21 = arith.mulf %16, %20 : vector<8x128xf32>
    %c0_6 = arith.constant 0 : index
    %c0_7 = arith.constant 0 : index
    %22 = vector.load %arg2[%c0_6, %c0_7] : memref<256x384xf32, #tpu.memory_space<vmem>>, vector<256x384xf32>
    %cst_8 = arith.constant dense<0.000000e+00> : vector<8x384xf32>
    %23 = tpu.matmul %0, %22, %cst_8 {dimension_numbers = #tpu.dot_dimension_numbers<[1], [0], [0], [1], [0, 0, 1, 1], [], []>} : vector<8x256xf32>, vector<256x384xf32>, vector<8x384xf32> -> vector<8x384xf32>
    %c0_9 = arith.constant 0 : index
    %c0_10 = arith.constant 0 : index
    %24 = vector.load %arg3[%c0_9, %c0_10] : memref<1x384xf32, #tpu.memory_space<vmem>>, vector<1x384xf32>
    %25 = vector.broadcast %24 : vector<1x384xf32> to vector<8x384xf32>
    %26 = arith.addf %23, %25 : vector<8x384xf32>
    %27 = vector.extract_strided_slice %26 {offsets = [0, 0], sizes = [8, 256], strides = [1, 1]} : vector<8x384xf32> to vector<8x256xf32>
    %cst_11 = arith.constant 0.000000e+00 : f32
    %28 = vector.broadcast %cst_11 : f32 to vector<8x256xf32>
    %29 = arith.maximumf %27, %28 : vector<8x256xf32>
    %30 = vector.extract_strided_slice %26 {offsets = [0, 256], sizes = [8, 128], strides = [1, 1]} : vector<8x384xf32> to vector<8x128xf32>
    %c0_12 = arith.constant 0 : index
    %c0_13 = arith.constant 0 : index
    %31 = vector.load %arg4[%c0_12, %c0_13] : memref<128x128xf32, #tpu.memory_space<vmem>>, vector<128x128xf32>
    %cst_14 = arith.constant dense<0.000000e+00> : vector<8x128xf32>
    %32 = tpu.matmul %30, %31, %cst_14 {dimension_numbers = #tpu.dot_dimension_numbers<[1], [0], [0], [1], [0, 0, 1, 1], [], []>} : vector<8x128xf32>, vector<128x128xf32>, vector<8x128xf32> -> vector<8x128xf32>
    %c0_15 = arith.constant 0 : index
    %c0_16 = arith.constant 0 : index
    %33 = vector.load %arg5[%c0_15, %c0_16] : memref<1x128xf32, #tpu.memory_space<vmem>>, vector<1x128xf32>
    %34 = vector.broadcast %33 : vector<1x128xf32> to vector<8x128xf32>
    %35 = arith.addf %32, %34 : vector<8x128xf32>
    %cst_17 = arith.constant 0.000000e+00 : f32
    %36 = vector.broadcast %cst_17 : f32 to vector<8x128xf32>
    %37 = arith.maximumf %35, %36 : vector<8x128xf32>
    %38 = tpu.concatenate %29, %37 in 1 : vector<8x256xf32>, vector<8x128xf32> -> vector<8x384xf32>
    %c0_18 = arith.constant 0 : index
    %c0_19 = arith.constant 0 : index
    %39 = vector.load %arg6[%c0_18, %c0_19] : memref<384x384xf32, #tpu.memory_space<vmem>>, vector<384x384xf32>
    %cst_20 = arith.constant dense<0.000000e+00> : vector<8x384xf32>
    %40 = tpu.matmul %38, %39, %cst_20 {dimension_numbers = #tpu.dot_dimension_numbers<[1], [0], [0], [1], [0, 0, 1, 1], [], []>} : vector<8x384xf32>, vector<384x384xf32>, vector<8x384xf32> -> vector<8x384xf32>
    %c0_21 = arith.constant 0 : index
    %c0_22 = arith.constant 0 : index
    %41 = vector.load %arg7[%c0_21, %c0_22] : memref<1x384xf32, #tpu.memory_space<vmem>>, vector<1x384xf32>
    %42 = vector.broadcast %41 : vector<1x384xf32> to vector<8x384xf32>
    %43 = arith.addf %40, %42 : vector<8x384xf32>
    %44 = vector.extract_strided_slice %43 {offsets = [0, 0], sizes = [8, 128], strides = [1, 1]} : vector<8x384xf32> to vector<8x128xf32>
    %45 = vector.extract_strided_slice %43 {offsets = [0, 128], sizes = [8, 128], strides = [1, 1]} : vector<8x384xf32> to vector<8x128xf32>
    %46 = vector.extract_strided_slice %43 {offsets = [0, 256], sizes = [8, 128], strides = [1, 1]} : vector<8x384xf32> to vector<8x128xf32>
    %47 = arith.mulf %44, %21 : vector<8x128xf32>
    %48 = arith.addf %47, %45 : vector<8x128xf32>
    %49 = arith.addf %48, %46 : vector<8x128xf32>
    %c0_23 = arith.constant 0 : index
    %c0_24 = arith.constant 0 : index
    %50 = vector.load %arg8[%c0_23, %c0_24] : memref<8x128xf32, #tpu.memory_space<vmem>>, vector<8x128xf32>
    tpu.vector_store %arg8[%c0_23, %c0_24], %49 {strides = array<i32>} : memref<8x128xf32, #tpu.memory_space<vmem>>, vector<8x128xf32>,
    return
  }
  func.func @transform_0(%arg0: i32) -> (i32, i32) {
    %c0_i32 = arith.constant 0 : i32
    %c0_i32_0 = arith.constant 0 : i32
    return %arg0, %c0_i32 : i32, i32
  }
  func.func @transform_1(%arg0: i32) -> (i32, i32) {
    %c0_i32 = arith.constant 0 : i32
    %c0_i32_0 = arith.constant 0 : i32
    %c0_i32_1 = arith.constant 0 : i32
    return %c0_i32, %c0_i32_0 : i32, i32
  }
  func.func @transform_2(%arg0: i32) -> (i32, i32) {
    %c0_i32 = arith.constant 0 : i32
    %c0_i32_0 = arith.constant 0 : i32
    %c0_i32_1 = arith.constant 0 : i32
    return %c0_i32, %c0_i32_0 : i32, i32
  }
  func.func @transform_3(%arg0: i32) -> (i32, i32) {
    %c0_i32 = arith.constant 0 : i32
    %c0_i32_0 = arith.constant 0 : i32
    %c0_i32_1 = arith.constant 0 : i32
    return %c0_i32, %c0_i32_0 : i32, i32
  }
  func.func @transform_4(%arg0: i32) -> (i32, i32) {
    %c0_i32 = arith.constant 0 : i32
    %c0_i32_0 = arith.constant 0 : i32
    %c0_i32_1 = arith.constant 0 : i32
    return %c0_i32, %c0_i32_0 : i32, i32
  }
  func.func @transform_5(%arg0: i32) -> (i32, i32) {
    %c0_i32 = arith.constant 0 : i32
    %c0_i32_0 = arith.constant 0 : i32
    %c0_i32_1 = arith.constant 0 : i32
    return %c0_i32, %c0_i32_0 : i32, i32
  }
  func.func @transform_6(%arg0: i32) -> (i32, i32) {
    %c0_i32 = arith.constant 0 : i32
    %c0_i32_0 = arith.constant 0 : i32
    %c0_i32_1 = arith.constant 0 : i32
    return %c0_i32, %c0_i32_0 : i32, i32
  }
  func.func @transform_7(%arg0: i32) -> (i32, i32) {
    %c0_i32 = arith.constant 0 : i32
    %c0_i32_0 = arith.constant 0 : i32
    return %arg0, %c0_i32 : i32, i32
  }
}

</mosaic_0001>

<bundles_post_ra>
// kernel: tpu_custom_call.1
= control target key start
LH: loop header
LB: loop body
LE: loop exit
PB: predicated region body
PF: predicated region fallthrough
CT: control target
= control target key end

     0   :  { %s1710_s0 = inlined_call_operand.hbm [shape: f32[16,256], index: 0, kind: input, shape index: {}]   ;;  %s1711_s1 = inlined_call_operand.hbm [shape: f32[256,384], index: 1, kind: input, shape index: {}]   ;;  %s1712_s2 = inlined_call_operand.hbm [shape: f32[1,384], index: 2, kind: input, shape index: {}]   ;;  %s1713_s3 = inlined_call_operand.hbm [shape: f32[128,128], index: 3, kind: input, shape index: {}]   ;;  %s1714_s4 = inlined_call_operand.vmem [shape: f32[1,128], index: 4, kind: input, shape index: {}]   ;;  %s1715_s5 = inlined_call_operand.hbm [shape: f32[384,384], index: 5, kind: input, shape index: {}]   ;;  %s1716_s6 = inlined_call_operand.vmem [shape: f32[1,384], index: 6, kind: input, shape index: {}]   ;;  %s1717_s7 = inlined_call_operand.hbm [shape: f32[16,128], index: 7, kind: output, shape index: {}]  }
   0x1   :  { %1718 = sst [smem:[#allocation16_spill]] %s1711_s1 }
   0x2   :  { %1719 = sst [smem:[#allocation17_spill]] %s1712_s2 }
   0x3   :  { %12 = vsyncpa [#allocation3], 0 }
   0x4   :  { %14 = vsyncpa [#allocation3 + $0x1], 0 }
   0x5   :  { %15 = vsyncpa [#allocation6], 0 }
   0x6   :  { %16 = vsyncpa [#allocation9], 0 }
   0x7   :  { %17 = vsyncpa [#allocation4], 0 }
   0x8   :  { %19 = vsyncpa [#allocation4 + $0x1], 0  ;;  %s1503_s24 = smov 0   ;;  %s1505_s25 = smov 0  }
   0x9   :  { %s1507_s26 = smov 0   ;;  %s1509_s27 = smov 0  }
   0xa LB: > { %s1720_s1 = sld [smem:[#allocation16_spill]]  ;;  %s1527_s8 = sadd.s32 4294967295, %s1453_s27   ;;  %s1453_s27 = sphi %s1509_s27, %s1733_s27   ;;  %s1449_s26 = sphi %s1507_s26, %s1732_s26   ;;  %s1445_s25 = sphi %s1505_s25, %s1731_s25   ;;  %s1441_s24 = sphi %s1503_s24, %s1730_s24  }
   0xb   : > { %p1114_p0 = scmp.ge.s32.totalorder %s1453_s27, 1  ;;  %p46_p1 = scmp.eq.s32.totalorder %s1527_s8, 0 }
   0xc   : > { %p208_p2 = scmp.lt.s32.totalorder %s1453_s27, 3  ;;  %s1455_s10 = smov [#allocation5]  }
   0xd   : > { %s221_s11 = sshll.u32 %s1455_s10, 4  ;;  %s245_s14 = sshll.u32 %s1713_s3, 4  ;;  %s222_s11 = int_to_ptr.vmem [resolvable:$true] %s221_s11  ;;  %s246_s14 = int_to_ptr.hbm [resolvable:$true] %s245_s14 }
   0xe   : > { %p1532_p3 = pnand %p1114_p0, %p208_p2  ;;  %s1456_s16 = smov [#allocation8]  }
   0xf   : > { %s247_s17 = sshll.u32 %s1456_s16, 4  ;;  %s1457_s18 = smov 384   ;;  %s248_s17 = int_to_ptr.vmem [resolvable:$true] %s247_s17 }
  0x10   : > { %s219_s30 = sshll.u32 %s1720_s1, 4  ;;  %p1155_p4 = pneg %p1532_p3  ;;  %s220_s30 = int_to_ptr.hbm [resolvable:$true] %s219_s30 }
  0x11   : > { %s1458_s19 = smov 24   ;;  %s1459_s20 = smov 128  }
  0x12   : > { %p1544_p6 = pnand %p1155_p4, %p46_p1  ;;  %s1460_s21 = smov 8  }
  0x13   : > { %s1723_s2 = sld [smem:[#allocation17_spill]]  ;;  %s1461_s29 = smov [#allocation7]  }
  0x14   : > { %1158 = dma.hbm_to_vmem [thread:$0]  (!%p1544_p6), %s220_s30, 12288, %s222_s11, [#allocation6], %s1457_s18, %s1457_s18, %s1458_s19  }
  0x15   : > { %1164 = dma.hbm_to_vmem [thread:$0]  (!%p1544_p6), %s246_s14, 2048, %s248_s17, [#allocation9], %s1459_s20, %s1459_s20, %s1460_s21  }
  0x16   : > { %s236_s30 = sshll.u32 %s1461_s29, 4  ;;  %s262_s12 = sshll.u32 %s1715_s5, 4  ;;  %s237_s30 = int_to_ptr.vmem [resolvable:$true] %s236_s30  ;;  %s263_s12 = int_to_ptr.hbm [resolvable:$true] %s262_s12 }
  0x17   : > { %s1462_s13 = smov [#allocation10]   ;;  %s1113_s16 = sadd.s32 4294967294, %s1453_s27  }
  0x18   : > { %s264_s14 = sshll.u32 %s1462_s13, 4  ;;  %s1564_s17 = sadd.s32 1, %s1453_s27   ;;  %s265_s14 = int_to_ptr.vmem [resolvable:$true] %s264_s14 }
  0x19   : > { %s234_s28 = sshll.u32 %s1723_s2, 4  ;;  %s29_s20 = ssub.s32 %s1453_s27, %s1564_s17  ;;  %s235_s28 = int_to_ptr.hbm [resolvable:$true] %s234_s28 }
  0x1a   : > { %1161 = dma.hbm_to_vmem [thread:$0]  (!%p1544_p6), %s235_s28, 48, %s237_s30, [#allocation6]  }
  0x1b   : > { %1167 = dma.hbm_to_vmem [thread:$0]  (!%p1544_p6), %s263_s12, 18432, %s265_s14, [#allocation9], %s1457_s18, %s1457_s18, %s1458_s19  }
  0x1c   : > { %s32_s21 = sadd.s32 1, %s1449_s26  ;;  %p30_p7 = scmp.eq.s32.totalorder %s29_s20, 0 }
  0x1d   : > { %p39_p8 = scmp.ne.s32.totalorder %s1449_s26, %s1445_s25  ;;  %p40_p9 = scmp.eq.s32.totalorder %s1453_s27, 0 }
  0x1e   : > { %p45_p10 = scmp.ne.s32.totalorder %s1445_s25, %s1441_s24  ;;  %p195_p13 = scmp.eq.s32.totalorder %s1527_s8, 1 }
  0x1f   : > { %s1575_s22 = scalar_select %p30_p7, %s1449_s26, %s32_s21  }
  0x20   : > { %p1577_p11 = por %p40_p9, %p39_p8  ;;  %p1583_p12 = por %p46_p1, %p45_p10 }
  0x21   : > { %p201_p0 = scmp.eq.s32.totalorder %s1113_s16, 1  ;;  %p1180_p2 = scmp.lt.s32.totalorder %s1453_s27, 2 }
  0x22   : > { %s281_s18 = sand.u32 1, %s1449_s26   ;;  %p1590_p4 = por %p195_p13, %p39_p8 }
  0x23   : > { %p1594_p6 = por %p201_p0, %p45_p10  ;;  %s1120_s29 = sshll.u32 %s281_s18, 4 }
  0x24   : > { %s1134_s30 = sshll.u32 %s1453_s27, 4  ;;  %s285_s13 = scalar_lea.vmem [#allocation2], %s1120_s29 }
  0x25   : > { %s290_s12 = scalar_lea.hbm %s1710_s0, %s1134_s30  ;;  %s294_s14 = sshll.u32 %s285_s13, 4  ;;  %s295_s14 = int_to_ptr.vmem [resolvable:$true] %s294_s14 }
  0x26   : > { %s292_s20 = sshll.u32 %s290_s12, 4  ;;  %p1604_p7 = pnand %p1180_p2, %p1577_p11  ;;  %s293_s20 = int_to_ptr.hbm [resolvable:$true] %s292_s20 }
  0x27   : > { %s282_s21 = scalar_lea.sflag [#allocation3], %s281_s18  ;;  %s1349_s1 = sshra.s32 %s293_s20, 4  ;;  %s1350_s1 = int_to_ptr.hbm [resolvable:$true] %s1349_s1 }
  0x28   : > { %s1351_s2 = scalar_lea.hbm %s1350_s1, 16  ;;  %p1353_p9 = pneg %p1604_p7 }
  0x29   : > { %p1352_p8 = scmp.ne.s32.totalorder %s1350_s1, %s1351_s2  ;;  %s1356_s10 = scalar_lea.hbm %s1710_s0, 32 }
  0x2a   : > { %p1357_p11 = scmp.lt.s32.totalorder %s1350_s1, %s1710_s0  ;;  %p1358_p0 = scmp.lt.s32.totalorder %s1356_s10, %s1351_s2 }
  0x2b   : > { %p1354_p10 = pnand %p1353_p9, %p1352_p8 }
  0x2c   : > { %p1359_p2 = por %p1358_p0, %p1357_p11 }
  0x2d   : > { %p1355_p13 = pneg %p1354_p10 }
  0x2f   : > { %p1360_p5 = pnand %p1359_p2, %p1355_p13 }
  0x31   : > { %1363 = shalt.err (!%p1360_p5)
}
  0x32   : > { %1171 = dma.hbm_to_vmem [thread:$0]  (!%p1604_p7), %s293_s20, 256, %s295_s14, %s282_s21  }
  0x33   : > { %303 = sbr.rel (%p1532_p3) target bundleno = 536 (0x218), region = 48  ;;  %s1621_s18 = sand.u32 (!%p1532_p3), 1, %s1445_s25  }
  0x34   : > { %s1124_s12 = sshll.u32 (!%p1532_p3), %s1621_s18, 4  ;;  %s306_s13 = scalar_lea.sflag (!%p1532_p3), [#allocation3], %s1621_s18 }
  0x35   : > { %s1625_s29 = scalar_lea.vmem (!%p1532_p3), [#allocation2], %s1124_s12 }
  0x38   : > { %1424 = dma.done.wait (%p1583_p12), %s306_s13, 256  }
  0x39   : > { %1426 = vsyncadd (%p1583_p12), %s306_s13, 4294967040 }
  0x3a   : > { %1428 = dma.done.wait (%p46_p1), [#allocation6], 12336  }
  0x3b   : > { %1430 = vsyncadd (%p46_p1), [#allocation6], 4294954960 }
  0x3c   : > { %1432 = dma.done.wait (%p46_p1), [#allocation9], 20480  }
  0x3d   : > { %1434 = vsyncadd (%p46_p1), [#allocation9], 4294946816  ;;  %v431_v0 = vld [vmem:[#allocation5 + $0x168] sm:$0xff]  ;;  %v428_v1 = vld [vmem:[#allocation5 + $0x150] sm:$0xff]  ;;  %s1129_s14 = sshll.u32 %s1621_s18, 3  ;;  %s1131_s20 = sshll.u32 %s1527_s8, 3 }
  0x3e   : > { %v479_v2 = vld [vmem:[#allocation5 + $0x2e8] sm:$0xff]  ;;  %490 = vmatpush.msra.mxu0 %v431_v0  ;;  %v476_v3 = vld [vmem:[#allocation5 + $0x2d0] sm:$0xff]  ;;  %v425_v4 = vld [vmem:[#allocation5 + $0x138] sm:$0xff]  ;;  %s1000_s30 = scalar_lea.hbm %s1717_s7, %s1131_s20  ;;  %s360_s10 = scalar_lea.vmem [#allocation11], %s1129_s14 }
  0x3f   : > { %510 = vmatpush.msra.mxu1 %v479_v2  ;;  %v473_v5 = vld [vmem:[#allocation5 + $0x2b8] sm:$0xff]  ;;  %v422_v6 = vld [vmem:[#allocation5 + $0x120] sm:$0xff]  ;;  %v419_v8 = vld [vmem:[#allocation5 + $0x108] sm:$0xff]  ;;  %s1002_s11 = sshll.u32 %s360_s10, 4  ;;  %s1004_s23 = sshll.u32 %s1000_s30, 4  ;;  %s1003_s11 = int_to_ptr.vmem [resolvable:$true] %s1002_s11  ;;  %s1005_s23 = int_to_ptr.hbm [resolvable:$true] %s1004_s23 }
  0x40   : > { %491 = vmatpush.msra.mxu0 %v428_v1  ;;  %v470_v7 = vld [vmem:[#allocation5 + $0x2a0] sm:$0xff]  ;;  %v467_v9 = vld [vmem:[#allocation5 + $0x288] sm:$0xff]  ;;  %v416_v10 = vld [vmem:[#allocation5 + $0xf0] sm:$0xff]  ;;  %s990_s8 = scalar_lea.sflag [#allocation4], %s1621_s18  ;;  %s1393_s12 = sshra.s32 %s1005_s23, 4  ;;  %s1394_s12 = int_to_ptr.hbm [resolvable:$true] %s1393_s12 }
  0x41   : > { %511 = vmatpush.msra.mxu1 %v476_v3  ;;  %v464_v11 = vld [vmem:[#allocation5 + $0x270] sm:$0xff]  ;;  %v429_v13 = vld [vmem:[#allocation5 + $0x158] sm:$0xff]  ;;  %v426_v17 = vld [vmem:[#allocation5 + $0x140] sm:$0xff]  ;;  %s1395_s13 = scalar_lea.hbm %s1394_s12, 8  ;;  %s1399_s2 = scalar_lea.hbm %s1717_s7, 16 }
  0x42   : > { %492 = vmatpush.msra.mxu0 %v425_v4  ;;  %v432_v12 = vld [vmem:[#allocation5 + $0x170] sm:$0xff]  ;;  %v413_v15 = vld [vmem:[#allocation5 + $0xd8] sm:$0xff]  ;;  %v410_v19 = vld [vmem:[#allocation5 + $0xc0] sm:$0xff]  ;;  %p1396_p1 = scmp.ne.s32.totalorder %s1394_s12, %s1395_s13  ;;  %p1400_p12 = scmp.lt.s32.totalorder %s1394_s12, %s1717_s7 }
  0x43   : > { %512 = vmatpush.msra.mxu1 %v473_v5  ;;  %v480_v14 = vld [vmem:[#allocation5 + $0x2f0] sm:$0xff]  ;;  %v461_v16 = vld [vmem:[#allocation5 + $0x258] sm:$0xff]  ;;  %530 = vmatpush.msra.mxu2 %v432_v12  ;;  %v458_v20 = vld [vmem:[#allocation5 + $0x240] sm:$0xff]  ;;  %p1401_p7 = scmp.lt.s32.totalorder %s1399_s2, %s1395_s13 }
  0x44   : > { %493 = vmatpush.msra.mxu0 %v422_v6  ;;  %550 = vmatpush.msra.mxu3 %v480_v14  ;;  %v477_v18 = vld [vmem:[#allocation5 + $0x2d8] sm:$0xff]  ;;  %v474_v21 = vld [vmem:[#allocation5 + $0x2c0] sm:$0xff]  ;;  %v423_v22 = vld [vmem:[#allocation5 + $0x128] sm:$0xff]  ;;  %p1397_p3 = pnand %p1396_p1, %p1590_p4 }
  0x45   : > { %513 = vmatpush.msra.mxu1 %v470_v7  ;;  %531 = vmatpush.msra.mxu2 %v429_v13  ;;  %v471_v23 = vld [vmem:[#allocation5 + $0x2a8] sm:$0xff]  ;;  %v420_v26 = vld [vmem:[#allocation5 + $0x110] sm:$0xff]  ;;  %v417_v30 = vld [vmem:[#allocation5 + $0xf8] sm:$0xff]  ;;  %p1402_p8 = por %p1401_p7, %p1400_p12 }
  0x46   : > { %494 = vmatpush.msra.mxu0 %v419_v8  ;;  %551 = vmatpush.msra.mxu3 %v477_v18  ;;  %v407_v24 = vld [vmem:[#allocation5 + $0xa8] sm:$0xff]  ;;  %v468_v27 = vld [vmem:[#allocation5 + $0x290] sm:$0xff]  ;;  %v465_v31 = vld [vmem:[#allocation5 + $0x278] sm:$0xff]  ;;  %p1398_p5 = pneg %p1397_p3 }
  0x47   : > { %514 = vmatpush.msra.mxu1 %v467_v9  ;;  %v455_v25 = vld [vmem:[#allocation5 + $0x228] sm:$0xff]  ;;  %532 = vmatpush.msra.mxu2 %v426_v17  ;;  %v404_v28 = vld [vmem:[#allocation5 + $0x90] sm:$0xff]  ;;  %v401_v32 = vld [vmem:[#allocation5 + $0x78] sm:$0xff] }
  0x48   : > { %495 = vmatpush.msra.mxu0 %v416_v10  ;;  %552 = vmatpush.msra.mxu3 %v474_v21  ;;  %v452_v29 = vld [vmem:[#allocation5 + $0x210] sm:$0xff]  ;;  %v449_v33 = vld [vmem:[#allocation5 + $0x1f8] sm:$0xff]  ;;  %v414_v34 = vld [vmem:[#allocation5 + $0xe0] sm:$0xff]  ;;  %p1403_p9 = pnand %p1402_p8, %p1398_p5 }
  0x49   : > { %515 = vmatpush.msra.mxu1 %v464_v11  ;;  %533 = vmatpush.msra.mxu2 %v423_v22  ;;  %v462_v35 = vld [vmem:[#allocation5 + $0x260] sm:$0xff]  ;;  %v411_v38 = vld [vmem:[#allocation5 + $0xc8] sm:$0xff]  ;;  %v408_v42 = vld [vmem:[#allocation5 + $0xb0] sm:$0xff] }
  0x4a   : > { %496 = vmatpush.msra.mxu0 %v413_v15  ;;  %553 = vmatpush.msra.mxu3 %v471_v23  ;;  %v398_v36 = vld [vmem:[#allocation5 + $0x60] sm:$0xff]  ;;  %v459_v39 = vld [vmem:[#allocation5 + $0x248] sm:$0xff]  ;;  %v456_v43 = vld [vmem:[#allocation5 + $0x230] sm:$0xff] }
  0x4b   : > { %516 = vmatpush.msra.mxu1 %v461_v16  ;;  %534 = vmatpush.msra.mxu2 %v420_v26  ;;  %v446_v37 = vld [vmem:[#allocation5 + $0x1e0] sm:$0xff]  ;;  %v395_v40 = vld [vmem:[#allocation5 + $0x48] sm:$0xff]  ;;  %v392_v44 = vld [vmem:[#allocation5 + $0x30] sm:$0xff] }
  0x4c   : > { %497 = vmatpush.msra.mxu0 %v410_v19  ;;  %554 = vmatpush.msra.mxu3 %v468_v27  ;;  %v443_v41 = vld [vmem:[#allocation5 + $0x1c8] sm:$0xff]  ;;  %v440_v45 = vld [vmem:[#allocation5 + $0x1b0] sm:$0xff]  ;;  %v405_v46 = vld [vmem:[#allocation5 + $0x98] sm:$0xff] }
  0x4d   : > { %517 = vmatpush.msra.mxu1 %v458_v20  ;;  %535 = vmatpush.msra.mxu2 %v417_v30  ;;  %v453_v47 = vld [vmem:[#allocation5 + $0x218] sm:$0xff]  ;;  %v402_v50 = vld [vmem:[#allocation5 + $0x80] sm:$0xff]  ;;  %v399_v56 = vld [vmem:[#allocation5 + $0x68] sm:$0xff] }
  0x4e   : > { %498 = vmatpush.msra.mxu0 %v407_v24  ;;  %555 = vmatpush.msra.mxu3 %v465_v31  ;;  %v389_v48 = vld [vmem:[#allocation5 + $0x18] sm:$0xff]  ;;  %v450_v51 = vld [vmem:[#allocation5 + $0x200] sm:$0xff]  ;;  %v447_v57 = vld [vmem:[#allocation5 + $0x1e8] sm:$0xff] }
  0x4f   : > { %518 = vmatpush.msra.mxu1 %v455_v25  ;;  %536 = vmatpush.msra.mxu2 %v414_v34  ;;  %v437_v49 = vld [vmem:[#allocation5 + $0x198] sm:$0xff]  ;;  %v386_v52 = vld [vmem:[#allocation5] sm:$0xff]  ;;  %v396_v60 = vld [vmem:[#allocation5 + $0x50] sm:$0xff] }
  0x50   : > { %499 = vmatpush.msra.mxu0 %v404_v28  ;;  %556 = vmatpush.msra.mxu3 %v462_v35  ;;  %v434_v53 = vld [vmem:[#allocation5 + $0x180] sm:$0xff]  ;;  %v433_v54 = vld [vmem:[#allocation5 + $0x178] sm:$0xff]  ;;  %v444_v61 = vld [vmem:[#allocation5 + $0x1d0] sm:$0xff] }
  0x51   : > { %519 = vmatpush.msra.mxu1 %v452_v29  ;;  %537 = vmatpush.msra.mxu2 %v411_v38  ;;  %v481_v55 = vld [vmem:[#allocation5 + $0x2f8] sm:$0xff]  ;;  %v430_v58 = vld [vmem:[#allocation5 + $0x160] sm:$0xff]  ;;  %v427_v62 = vld [vmem:[#allocation5 + $0x148] sm:$0xff] }
  0x52   : > { %500 = vmatpush.msra.mxu0 %v401_v32  ;;  %557 = vmatpush.msra.mxu3 %v459_v39  ;;  %v478_v59 = vld [vmem:[#allocation5 + $0x2e0] sm:$0xff]  ;;  %v475_v63 = vld [vmem:[#allocation5 + $0x2c8] sm:$0xff]  ;;  %v393_v0 = vld [vmem:[#allocation5 + $0x38] sm:$0xff] }
  0x53   : > { %520 = vmatpush.msra.mxu1 %v449_v33  ;;  %538 = vmatpush.msra.mxu2 %v408_v42  ;;  %v441_v1 = vld [vmem:[#allocation5 + $0x1b8] sm:$0xff]  ;;  %v424_v2 = vld [vmem:[#allocation5 + $0x130] sm:$0xff]  ;;  %v390_v4 = vld [vmem:[#allocation5 + $0x20] sm:$0xff] }
  0x54   : > { %501 = vmatpush.msra.mxu0 %v398_v36  ;;  %558 = vmatpush.msra.mxu3 %v456_v43  ;;  %v472_v3 = vld [vmem:[#allocation5 + $0x2b0] sm:$0xff]  ;;  %v421_v6 = vld [vmem:[#allocation5 + $0x118] sm:$0xff]  ;;  %v387_v8 = vld [vmem:[#allocation5 + $0x8] sm:$0xff] }
  0x55   : > { %521 = vmatpush.msra.mxu1 %v446_v37  ;;  %539 = vmatpush.msra.mxu2 %v405_v46  ;;  %v1640_v5 = vld [vmem:[%s1625_s29] sm:$0xff]  ;;  %v469_v7 = vld [vmem:[#allocation5 + $0x298] sm:$0xff]  ;;  %v415_v13 = vld [vmem:[#allocation5 + $0xe8] sm:$0xff] }
  0x56   : > { %502 = vmatpush.msra.mxu0 %v395_v40  ;;  %559 = vmatpush.msra.mxu3 %v453_v47  ;;  %v438_v9 = vld [vmem:[#allocation5 + $0x1a0] sm:$0xff]  ;;  %v1644_v12 = vld [vmem:[%s1625_s29 + $0x8] sm:$0xff]  ;;  %v412_v17 = vld [vmem:[#allocation5 + $0xd0] sm:$0xff] }
  0x57   : > { %522 = vmatpush.msra.mxu1 %v443_v41  ;;  %540 = vmatpush.msra.mxu2 %v402_v50  ;;  %v418_v10 = vld [vmem:[#allocation5 + $0x100] sm:$0xff]  ;;  %v463_v14 = vld [vmem:[#allocation5 + $0x268] sm:$0xff]  ;;  %v460_v18 = vld [vmem:[#allocation5 + $0x250] sm:$0xff] }
  0x58   : > { %503 = vmatpush.msra.mxu0 %v392_v44  ;;  %560 = vmatpush.msra.mxu3 %v450_v51  ;;  %v466_v11 = vld [vmem:[#allocation5 + $0x280] sm:$0xff]  ;;  %v435_v15 = vld [vmem:[#allocation5 + $0x188] sm:$0xff]  ;;  %v626_v19 = vld [vmem:[#allocation8 + $0x70] sm:$0xff] }
  0x59   : > { %523 = vmatpush.msra.mxu1 %v440_v45  ;;  %541 = vmatpush.msra.mxu2 %v399_v56  ;;  %v627_v16 = vld [vmem:[#allocation8 + $0x78] sm:$0xff]  ;;  %v698_v22 = vld [vmem:[#allocation10 + $0x168] sm:$0xff]  ;;  %v695_v26 = vld [vmem:[#allocation10 + $0x150] sm:$0xff] }
  0x5a   : > { %504 = vmatpush.msra.mxu0 %v389_v48  ;;  %561 = vmatpush.msra.mxu3 %v447_v57  ;;  %v409_v20 = vld [vmem:[#allocation5 + $0xb8] sm:$0xff]  ;;  %v625_v23 = vld [vmem:[#allocation8 + $0x68] sm:$0xff]  ;;  %v406_v24 = vld [vmem:[#allocation5 + $0xa0] sm:$0xff] }
  0x5b   : > { %524 = vmatpush.msra.mxu1 %v437_v49  ;;  %542 = vmatpush.msra.mxu2 %v396_v60  ;;  %v457_v21 = vld [vmem:[#allocation5 + $0x238] sm:$0xff]  ;;  %v454_v25 = vld [vmem:[#allocation5 + $0x220] sm:$0xff]  ;;  %v403_v28 = vld [vmem:[#allocation5 + $0x88] sm:$0xff] }
  0x5c   : > { %505 = vmatpush.msra.mxu0 %v386_v52  ;;  %562 = vmatpush.msra.mxu3 %v444_v61  ;;  %v624_v27 = vld [vmem:[#allocation8 + $0x60] sm:$0xff]  ;;  %v692_v30 = vld [vmem:[#allocation10 + $0x138] sm:$0xff]  ;;  %v400_v32 = vld [vmem:[#allocation5 + $0x70] sm:$0xff] }
  0x5d   : > { %525 = vmatpush.msra.mxu1 %v434_v53  ;;  %543 = vmatpush.msra.mxu2 %v393_v0  ;;  %v451_v29 = vld [vmem:[#allocation5 + $0x208] sm:$0xff]  ;;  %v623_v31 = vld [vmem:[#allocation8 + $0x58] sm:$0xff]  ;;  %v448_v33 = vld [vmem:[#allocation5 + $0x1f0] sm:$0xff] }
  0x5e   : > { %570 = vmatpush.msrb.mxu0 %v433_v54  ;;  %563 = vmatpush.msra.mxu3 %v441_v1  ;;  %v689_v34 = vld [vmem:[#allocation10 + $0x120] sm:$0xff]  ;;  %v622_v35 = vld [vmem:[#allocation8 + $0x50] sm:$0xff]  ;;  %v686_v38 = vld [vmem:[#allocation10 + $0x108] sm:$0xff] }
  0x5f   : > { %590 = vmatpush.msrb.mxu1 %v481_v55  ;;  %544 = vmatpush.msra.mxu2 %v390_v4  ;;  %v397_v36 = vld [vmem:[#allocation5 + $0x58] sm:$0xff]  ;;  %v621_v39 = vld [vmem:[#allocation8 + $0x48] sm:$0xff]  ;;  %v394_v40 = vld [vmem:[#allocation5 + $0x40] sm:$0xff] }
  0x60   : > { %571 = vmatpush.msrb.mxu0 %v430_v58  ;;  %564 = vmatpush.msra.mxu3 %v438_v9  ;;  %v445_v37 = vld [vmem:[#allocation5 + $0x1d8] sm:$0xff]  ;;  %v442_v41 = vld [vmem:[#allocation5 + $0x1c0] sm:$0xff]  ;;  %v391_v44 = vld [vmem:[#allocation5 + $0x28] sm:$0xff] }
  0x61   : > { %591 = vmatpush.msrb.mxu1 %v478_v59  ;;  %506 = vmatmul.f32.vlgmr.msra.gmra.mxu0 %v1640_v5  ;;  %v683_v42 = vld [vmem:[#allocation10 + $0xf0] sm:$0xff]  ;;  %v620_v43 = vld [vmem:[#allocation8 + $0x40] sm:$0xff]  ;;  %v680_v46 = vld [vmem:[#allocation10 + $0xd8] sm:$0xff] }
  0x62   : > { %572 = vmatpush.msrb.mxu0 %v427_v62  ;;  %545 = vmatpush.msra.mxu2 %v387_v8  ;;  %v439_v45 = vld [vmem:[#allocation5 + $0x1a8] sm:$0xff]  ;;  %v619_v47 = vld [vmem:[#allocation8 + $0x38] sm:$0xff]  ;;  %v388_v48 = vld [vmem:[#allocation5 + $0x10] sm:$0xff] }
  0x63   : > { %592 = vmatpush.msrb.mxu1 %v475_v63  ;;  %546 = vmatmul.f32.vlgmr.msra.gmra.mxu2 %v1640_v5  ;;  %v436_v49 = vld [vmem:[#allocation5 + $0x190] sm:$0xff]  ;;  %v677_v50 = vld [vmem:[#allocation10 + $0xc0] sm:$0xff]  ;;  %v740_v58 = vld [vmem:[#allocation10 + $0x2b8] sm:$0xff] }
  0x64   : > { %573 = vmatpush.msrb.mxu0 %v424_v2  ;;  %526 = vmatmul.f32.vlgmr.msra.gmra.mxu1 %v1644_v12  ;;  %v618_v51 = vld [vmem:[#allocation8 + $0x30] sm:$0xff]  ;;  %v746_v52 = vld [vmem:[#allocation10 + $0x2e8] sm:$0xff]  ;;  %v616_v57 = vld [vmem:[#allocation8 + $0x20] sm:$0xff] }
  0x65   : > { %593 = vmatpush.msrb.mxu1 %v472_v3  ;;  %565 = vmatpush.msra.mxu3 %v435_v15  ;;  %v674_v53 = vld [vmem:[#allocation10 + $0xa8] sm:$0xff]  ;;  %v743_v55 = vld [vmem:[#allocation10 + $0x2d0] sm:$0xff]  ;;  %v668_v59 = vld [vmem:[#allocation10 + $0x78] sm:$0xff] }
  0x66   : > { %574 = vmatpush.msrb.mxu0 %v421_v6  ;;  %632 = vmatpush.msrb.mxu2 %v627_v16  ;;  %v617_v54 = vld [vmem:[#allocation8 + $0x28] sm:$0xff]  ;;  %v671_v56 = vld [vmem:[#allocation10 + $0x90] sm:$0xff]  ;;  %v615_v60 = vld [vmem:[#allocation8 + $0x18] sm:$0xff] }
  0x67   : > { %594 = vmatpush.msrb.mxu1 %v469_v7  ;;  %566 = vmatmul.f32.vlgmr.msra.gmra.mxu3 %v1644_v12  ;;  %v737_v61 = vld [vmem:[#allocation10 + $0x2a0] sm:$0xff]  ;;  %v614_v63 = vld [vmem:[#allocation8 + $0x10] sm:$0xff]  ;;  %v734_v0 = vld [vmem:[#allocation10 + $0x288] sm:$0xff] }
  0x68   : > { %575 = vmatpush.msrb.mxu0 %v418_v10  ;;  %633 = vmatpush.msrb.mxu2 %v626_v19  ;;  %v665_v62 = vld [vmem:[#allocation10 + $0x60] sm:$0xff]  ;;  %v662_v1 = vld [vmem:[#allocation10 + $0x48] sm:$0xff]  ;;  %v731_v3 = vld [vmem:[#allocation10 + $0x270] sm:$0xff] }
  0x69   : > { %595 = vmatpush.msrb.mxu1 %v466_v11  ;;  %805 = vmatpush.msrb.mxu3 %v698_v22  ;;  %v613_v2 = vld [vmem:[#allocation8 + $0x8] sm:$0xff]  ;;  %v659_v4 = vld [vmem:[#allocation10 + $0x30] sm:$0xff]  ;;  %v612_v6 = vld [vmem:[#allocation8] sm:$0xff] }
  0x6a   : > { %576 = vmatpush.msrb.mxu0 %v415_v13  ;;  %634 = vmatpush.msrb.mxu2 %v625_v23  ;;  %v699_v7 = vld [vmem:[#allocation10 + $0x170] sm:$0xff]  ;;  %v728_v8 = vld [vmem:[#allocation10 + $0x258] sm:$0xff]  ;;  %v725_v11 = vld [vmem:[#allocation10 + $0x240] sm:$0xff] }
  0x6b   : > { %596 = vmatpush.msrb.mxu1 %v463_v14  ;;  %806 = vmatpush.msrb.mxu3 %v695_v26  ;;  %v656_v9 = vld [vmem:[#allocation10 + $0x18] sm:$0xff]  ;;  %v747_v13 = vld [vmem:[#allocation10 + $0x2f0] sm:$0xff]  ;;  %v693_v14 = vld [vmem:[#allocation10 + $0x140] sm:$0xff] }
  0x6c   : > { %577 = vmatpush.msrb.mxu0 %v412_v17  ;;  %635 = vmatpush.msrb.mxu2 %v624_v27  ;;  %v696_v10 = vld [vmem:[#allocation10 + $0x158] sm:$0xff]  ;;  %v690_v16 = vld [vmem:[#allocation10 + $0x128] sm:$0xff]  ;;  %v741_v17 = vld [vmem:[#allocation10 + $0x2c0] sm:$0xff] }
  0x6d   : > { %597 = vmatpush.msrb.mxu1 %v460_v18  ;;  %807 = vmatpush.msrb.mxu3 %v692_v30  ;;  %v744_v15 = vld [vmem:[#allocation10 + $0x2d8] sm:$0xff]  ;;  %v687_v18 = vld [vmem:[#allocation10 + $0x110] sm:$0xff]  ;;  %v738_v19 = vld [vmem:[#allocation10 + $0x2a8] sm:$0xff] }
  0x6e   : > { %578 = vmatpush.msrb.mxu0 %v409_v20  ;;  %636 = vmatpush.msrb.mxu2 %v623_v31  ;;  %v722_v20 = vld [vmem:[#allocation10 + $0x228] sm:$0xff]  ;;  %v735_v22 = vld [vmem:[#allocation10 + $0x290] sm:$0xff]  ;;  %v716_v26 = vld [vmem:[#allocation10 + $0x1f8] sm:$0xff] }
  0x6f   : > { %598 = vmatpush.msrb.mxu1 %v457_v21  ;;  %808 = vmatpush.msrb.mxu3 %v689_v34  ;;  %v684_v21 = vld [vmem:[#allocation10 + $0xf8] sm:$0xff]  ;;  %v719_v23 = vld [vmem:[#allocation10 + $0x210] sm:$0xff]  ;;  %v678_v27 = vld [vmem:[#allocation10 + $0xc8] sm:$0xff] }
  0x70   : > { %579 = vmatpush.msrb.mxu0 %v406_v24  ;;  %637 = vmatpush.msrb.mxu2 %v622_v35  ;;  %v681_v24 = vld [vmem:[#allocation10 + $0xe0] sm:$0xff]  ;;  %v675_v30 = vld [vmem:[#allocation10 + $0xb0] sm:$0xff]  ;;  %v726_v31 = vld [vmem:[#allocation10 + $0x248] sm:$0xff] }
  0x71   : > { %599 = vmatpush.msrb.mxu1 %v454_v25  ;;  %809 = vmatpush.msrb.mxu3 %v686_v38  ;;  %v732_v25 = vld [vmem:[#allocation10 + $0x278] sm:$0xff]  ;;  %v723_v34 = vld [vmem:[#allocation10 + $0x230] sm:$0xff] }
  0x72   : > { %580 = vmatpush.msrb.mxu0 %v403_v28  ;;  %638 = vmatpush.msrb.mxu2 %v621_v39  ;;  %v729_v28 = vld [vmem:[#allocation10 + $0x260] sm:$0xff]  ;;  %v707_v35 = vld [vmem:[#allocation10 + $0x1b0] sm:$0xff]  ;;  %v1652_v38 = vld [vmem:[#allocation7] sm:$0x7] }
  0x73   : > { %600 = vmatpush.msrb.mxu1 %v451_v29  ;;  %810 = vmatpush.msrb.mxu3 %v683_v42  ;;  %v713_v29 = vld [vmem:[#allocation10 + $0x1e0] sm:$0xff]  ;;  %v704_v39 = vld [vmem:[#allocation10 + $0x198] sm:$0xff]  ;;  %v484_v42 = vperm.slane %v1652_v38, 0 }
  0x74   : > { %581 = vmatpush.msrb.mxu0 %v400_v32  ;;  %639 = vmatpush.msrb.mxu2 %v620_v43  ;;  %v710_v32 = vld [vmem:[#allocation10 + $0x1c8] sm:$0xff]  ;;  %v701_v43 = vld [vmem:[#allocation10 + $0x180] sm:$0xff] }
  0x75   : > { %601 = vmatpush.msrb.mxu1 %v448_v33  ;;  %811 = vmatpush.msrb.mxu3 %v680_v46  ;;  %v672_v33 = vld [vmem:[#allocation10 + $0x98] sm:$0xff] }
  0x76   : > { %582 = vmatpush.msrb.mxu0 %v397_v36  ;;  %640 = vmatpush.msrb.mxu2 %v619_v47  ;;  %v669_v36 = vld [vmem:[#allocation10 + $0x80] sm:$0xff]  ;;  %v660_v46 = vld [vmem:[#allocation10 + $0x38] sm:$0xff]  ;;  %v711_v47 = vld [vmem:[#allocation10 + $0x1d0] sm:$0xff] }
  0x77   : > { %602 = vmatpush.msrb.mxu1 %v445_v37  ;;  %812 = vmatpush.msrb.mxu3 %v677_v50  ;;  %v720_v37 = vld [vmem:[#allocation10 + $0x218] sm:$0xff] }
  0x78   : > { %583 = vmatpush.msrb.mxu0 %v394_v40  ;;  %641 = vmatpush.msrb.mxu2 %v618_v51  ;;  %v666_v40 = vld [vmem:[#allocation10 + $0x68] sm:$0xff]  ;;  %v708_v50 = vld [vmem:[#allocation10 + $0x1b8] sm:$0xff] }
  0x79   : > { %603 = vmatpush.msrb.mxu1 %v442_v41  ;;  %363 = vadd.xlane.f32.xlu0 %v1640_v5  ;;  %v717_v41 = vld [vmem:[#allocation10 + $0x200] sm:$0xff] }
  0x7a   : > { %584 = vmatpush.msrb.mxu0 %v391_v44  ;;  %813 = vmatpush.msrb.mxu3 %v674_v53  ;;  %v663_v44 = vld [vmem:[#allocation10 + $0x50] sm:$0xff]  ;;  %v705_v53 = vld [vmem:[#allocation10 + $0x1a0] sm:$0xff] }
  0x7b   : > { %604 = vmatpush.msrb.mxu1 %v439_v45  ;;  %642 = vmatpush.msrb.mxu2 %v617_v54  ;;  %v714_v45 = vld [vmem:[#allocation10 + $0x1e8] sm:$0xff] }
  0x7c   : > { %585 = vmatpush.msrb.mxu0 %v388_v48  ;;  %814 = vmatpush.msrb.mxu3 %v671_v56  ;;  %v657_v48 = vld [vmem:[#allocation10 + $0x20] sm:$0xff]  ;;  %v702_v56 = vld [vmem:[#allocation10 + $0x188] sm:$0xff] }
  0x7d   : > { %605 = vmatpush.msrb.mxu1 %v436_v49  ;;  %586 = vmatmul.f32.vlgmr.msrb.gmra.mxu0 %v1640_v5 }
  0x7e   : > { %606 = vmatmul.f32.vlgmr.msrb.gmra.mxu1 %v1644_v12  ;;  %825 = vmatpush.msra.mxu0 %v746_v52  ;;  %v653_v12 = vld [vmem:[#allocation10] sm:$0xff]  ;;  %v654_v52 = vld [vmem:[#allocation10 + $0x8] sm:$0xff] }
  0x7f   : > { %643 = vmatpush.msrb.mxu2 %v616_v57  ;;  %815 = vmatpush.msrb.mxu3 %v668_v59  ;;  %v794_v57 = vld [vmem:[#allocation10 + $0x468] sm:$0xff]  ;;  %v366_v59 = vmul.f32 %v1640_v5, %v1640_v5 }
  0x80   : > { %826 = vmatpush.msra.mxu0 %v743_v55  ;;  %845 = vmatpush.msra.mxu1 %v794_v57  ;;  %v685_v57 = vld [vmem:[#allocation10 + $0x100] sm:$0xff] }
  0x81   : > { %644 = vmatpush.msrb.mxu2 %v615_v60  ;;  %816 = vmatpush.msrb.mxu3 %v665_v62  ;;  %v788_v62 = vld [vmem:[#allocation10 + $0x438] sm:$0xff] }
  0x82   : > { %827 = vmatpush.msra.mxu0 %v740_v58  ;;  %v791_v58 = vld [vmem:[#allocation10 + $0x450] sm:$0xff]  ;;  %367 = vadd.xlane.f32.xlu0 %v366_v59  ;;  %v718_v59 = vld [vmem:[#allocation10 + $0x208] sm:$0xff] }
  0x83   : > { %645 = vmatpush.msrb.mxu2 %v614_v63  ;;  %817 = vmatpush.msrb.mxu3 %v662_v1  ;;  %v785_v63 = vld [vmem:[#allocation10 + $0x420] sm:$0xff]  ;;  %v795_v1 = vld [vmem:[#allocation10 + $0x470] sm:$0xff] }
  0x84   : > { %828 = vmatpush.msra.mxu0 %v737_v61  ;;  %v485_v61 = vperm.slane %v1652_v38, 1  ;;  %846 = vmatpush.msra.mxu1 %v791_v58  ;;  %v721_v58 = vld [vmem:[#allocation10 + $0x220] sm:$0xff] }
  0x85   : > { %646 = vmatpush.msrb.mxu2 %v613_v2  ;;  %818 = vmatpush.msrb.mxu3 %v659_v4  ;;  %v796_v4 = vld [vmem:[#allocation10 + $0x478] sm:$0xff] }
  0x86   : > { %829 = vmatpush.msra.mxu0 %v734_v0  ;;  %847 = vmatpush.msra.mxu1 %v788_v62  ;;  %v712_v62 = vld [vmem:[#allocation10 + $0x1d8] sm:$0xff] }
  0x87   : > { %647 = vmatpush.msrb.mxu2 %v612_v6  ;;  %819 = vmatpush.msrb.mxu3 %v656_v9  ;;  %v792_v6 = vld [vmem:[#allocation10 + $0x458] sm:$0xff]  ;;  %v789_v9 = vld [vmem:[#allocation10 + $0x440] sm:$0xff] }
  0x88   : > { %830 = vmatpush.msra.mxu0 %v731_v3  ;;  %v782_v3 = vld [vmem:[#allocation10 + $0x408] sm:$0xff]  ;;  %848 = vmatpush.msra.mxu1 %v785_v63  ;;  %v765_v63 = vld [vmem:[#allocation10 + $0x380] sm:$0xff] }
  0x89   : > { %865 = vmatpush.msra.mxu2 %v699_v7  ;;  %820 = vmatpush.msrb.mxu3 %v653_v12  ;;  %v793_v7 = vld [vmem:[#allocation10 + $0x460] sm:$0xff]  ;;  %v786_v12 = vld [vmem:[#allocation10 + $0x428] sm:$0xff] }
  0x8a   : > { %831 = vmatpush.msra.mxu0 %v728_v8  ;;  %v779_v8 = vld [vmem:[#allocation10 + $0x3f0] sm:$0xff]  ;;  %849 = vmatpush.msra.mxu1 %v782_v3  ;;  %v762_v3 = vld [vmem:[#allocation10 + $0x368] sm:$0xff] }
  0x8b   : > { %866 = vmatpush.msra.mxu2 %v696_v10  ;;  %885 = vmatpush.msra.mxu3 %v747_v13  ;;  %v790_v10 = vld [vmem:[#allocation10 + $0x448] sm:$0xff] }
  0x8c   : > { %832 = vmatpush.msra.mxu0 %v725_v11  ;;  %850 = vmatpush.msra.mxu1 %v779_v8  ;;  %v759_v8 = vld [vmem:[#allocation10 + $0x350] sm:$0xff] }
  0x8d   : > { %867 = vmatpush.msra.mxu2 %v693_v14  ;;  %886 = vmatpush.msra.mxu3 %v744_v15  ;;  %v776_v14 = vld [vmem:[#allocation10 + $0x3d8] sm:$0xff]  ;;  %v787_v15 = vld [vmem:[#allocation10 + $0x430] sm:$0xff] }
  0x8e   : > { %833 = vmatpush.msra.mxu0 %v722_v20  ;;  %851 = vmatpush.msra.mxu1 %v776_v14  ;;  %v770_v20 = vld [vmem:[#allocation10 + $0x3a8] sm:$0xff]  ;;  %v757_v14 = vld [vmem:[#allocation10 + $0x340] sm:$0xff] }
  0x8f   : > { %868 = vmatpush.msra.mxu2 %v690_v16  ;;  %887 = vmatpush.msra.mxu3 %v741_v17  ;;  %v773_v17 = vld [vmem:[#allocation10 + $0x3c0] sm:$0xff] }
  0x90   : > { %834 = vmatpush.msra.mxu0 %v719_v23  ;;  %852 = vmatpush.msra.mxu1 %v773_v17  ;;  %v486_v23 = vperm.slane %v1652_v38, 2  ;;  %v758_v38 = vld [vmem:[#allocation10 + $0x348] sm:$0xff] }
  0x91   : > { %869 = vmatpush.msra.mxu2 %v687_v18  ;;  %888 = vmatpush.msra.mxu3 %v738_v19  ;;  %v783_v18 = vld [vmem:[#allocation10 + $0x410] sm:$0xff]  ;;  %v784_v19 = vld [vmem:[#allocation10 + $0x418] sm:$0xff]  ;;  %v670_v17 = vld [vmem:[#allocation10 + $0x88] sm:$0xff] }
  0x92   : > { %835 = vmatpush.msra.mxu0 %v716_v26  ;;  %853 = vmatpush.msra.mxu1 %v770_v20  ;;  %v778_v26 = vld [vmem:[#allocation10 + $0x3e8] sm:$0xff]  ;;  %v667_v20 = vld [vmem:[#allocation10 + $0x70] sm:$0xff] }
  0x93   : > { %870 = vmatpush.msra.mxu2 %v684_v21  ;;  %889 = vmatpush.msra.mxu3 %v735_v22  ;;  %v780_v21 = vld [vmem:[#allocation10 + $0x3f8] sm:$0xff]  ;;  %v781_v22 = vld [vmem:[#allocation10 + $0x400] sm:$0xff] }
  0x94   : > { %836 = vmatpush.msra.mxu0 %v713_v29 }
  0x95   : > { %871 = vmatpush.msra.mxu2 %v681_v24  ;;  %890 = vmatpush.msra.mxu3 %v732_v25  ;;  %v767_v24 = vld [vmem:[#allocation10 + $0x390] sm:$0xff]  ;;  %v777_v25 = vld [vmem:[#allocation10 + $0x3e0] sm:$0xff] }
  0x96   : > { %837 = vmatpush.msra.mxu0 %v710_v32  ;;  %854 = vmatpush.msra.mxu1 %v767_v24  ;;  %v655_v24 = vld [vmem:[#allocation10 + $0x10] sm:$0xff] }
  0x97   : > { %872 = vmatpush.msra.mxu2 %v678_v27  ;;  %891 = vmatpush.msra.mxu3 %v729_v28  ;;  %v764_v27 = vld [vmem:[#allocation10 + $0x378] sm:$0xff]  ;;  %v774_v28 = vld [vmem:[#allocation10 + $0x3c8] sm:$0xff] }
  0x98   : > { %838 = vmatpush.msra.mxu0 %v707_v35  ;;  %855 = vmatpush.msra.mxu1 %v764_v27  ;;  %v772_v35 = vld [vmem:[#allocation10 + $0x3b8] sm:$0xff] }
  0x99   : > { %873 = vmatpush.msra.mxu2 %v675_v30  ;;  %892 = vmatpush.msra.mxu3 %v726_v31  ;;  %v775_v31 = vld [vmem:[#allocation10 + $0x3d0] sm:$0xff] }
  0x9a   : > { %839 = vmatpush.msra.mxu0 %v704_v39  ;;  %v768_v39 = vld [vmem:[#allocation10 + $0x398] sm:$0xff] }
  0x9b   : > { %874 = vmatpush.msra.mxu2 %v672_v33  ;;  %893 = vmatpush.msra.mxu3 %v723_v34  ;;  %v761_v33 = vld [vmem:[#allocation10 + $0x360] sm:$0xff]  ;;  %v771_v34 = vld [vmem:[#allocation10 + $0x3b0] sm:$0xff] }
  0x9c   : > { %840 = vmatpush.msra.mxu0 %v701_v43  ;;  %856 = vmatpush.msra.mxu1 %v761_v33  ;;  %v742_v43 = vld [vmem:[#allocation10 + $0x2c8] sm:$0xff] }
  0x9d   : > { %875 = vmatpush.msra.mxu2 %v669_v36  ;;  %894 = vmatpush.msra.mxu3 %v720_v37  ;;  %v748_v37 = vld [vmem:[#allocation10 + $0x2f8] sm:$0xff] }
  0x9e   : > { %905 = vmatpush.msrb.mxu0 %v795_v1  ;;  %857 = vmatpush.msra.mxu1 %v758_v38  ;;  %v709_v1 = vld [vmem:[#allocation10 + $0x1c0] sm:$0xff] }
  0x9f   : > { %876 = vmatpush.msra.mxu2 %v666_v40  ;;  %895 = vmatpush.msra.mxu3 %v717_v41  ;;  %v769_v40 = vld [vmem:[#allocation10 + $0x3a0] sm:$0xff] }
  0xa0   : > { %906 = vmatpush.msrb.mxu0 %v792_v6  ;;  %v745_v41 = vld [vmem:[#allocation10 + $0x2e0] sm:$0xff]  ;;  %v706_v6 = vld [vmem:[#allocation10 + $0x1a8] sm:$0xff] }
  0xa1   : > { %877 = vmatpush.msra.mxu2 %v663_v44  ;;  %896 = vmatpush.msra.mxu3 %v714_v45  ;;  %v752_v44 = vld [vmem:[#allocation10 + $0x318] sm:$0xff]  ;;  %v739_v45 = vld [vmem:[#allocation10 + $0x2b0] sm:$0xff] }
  0xa2   : > { %907 = vmatpush.msrb.mxu0 %v789_v9  ;;  %v676_v9 = vld [vmem:[#allocation10 + $0xb8] sm:$0xff] }
  0xa3   : > { %878 = vmatpush.msra.mxu2 %v660_v46  ;;  %897 = vmatpush.msra.mxu3 %v711_v47  ;;  %v749_v46 = vld [vmem:[#allocation10 + $0x300] sm:$0xff]  ;;  %v700_v47 = vld [vmem:[#allocation10 + $0x178] sm:$0xff] }
  0xa4   : > { %908 = vmatpush.msrb.mxu0 %v786_v12  ;;  %v756_v12 = vld [vmem:[#allocation10 + $0x338] sm:$0xff] }
  0xa5   : > { %879 = vmatpush.msra.mxu2 %v657_v48  ;;  %898 = vmatpush.msra.mxu3 %v708_v50  ;;  %v736_v48 = vld [vmem:[#allocation10 + $0x298] sm:$0xff]  ;;  %v733_v50 = vld [vmem:[#allocation10 + $0x280] sm:$0xff] }
  0xa6   : > { %909 = vmatpush.msrb.mxu0 %v783_v18  ;;  %v754_v18 = vld [vmem:[#allocation10 + $0x328] sm:$0xff] }
  0xa7   : > { %880 = vmatpush.msra.mxu2 %v654_v52  ;;  %899 = vmatpush.msra.mxu3 %v705_v53  ;;  %v730_v52 = vld [vmem:[#allocation10 + $0x268] sm:$0xff]  ;;  %v691_v53 = vld [vmem:[#allocation10 + $0x130] sm:$0xff] }
  0xa8   : > { %910 = vmatpush.msrb.mxu0 %v780_v21  ;;  %v751_v21 = vld [vmem:[#allocation10 + $0x310] sm:$0xff] }
  0xa9   : > { %900 = vmatpush.msra.mxu3 %v702_v56  ;;  %v724_v56 = vld [vmem:[#allocation10 + $0x238] sm:$0xff] }
  0xaa   : > { %911 = vmatpush.msrb.mxu0 %v777_v25  ;;  %v1226_v25 = vld [vmem:[%s1714_s4] ss:$0 sm:$0xff] }
  0xac   : > { %912 = vmatpush.msrb.mxu0 %v774_v28 }
  0xae   : > { %913 = vmatpush.msrb.mxu0 %v771_v34 }
  0xb0   : > { %914 = vmatpush.msrb.mxu0 %v768_v39 }
  0xb2   : > { %915 = vmatpush.msrb.mxu0 %v765_v63 }
  0xb4   : > { %916 = vmatpush.msrb.mxu0 %v762_v3 }
  0xb6   : > { %917 = vmatpush.msrb.mxu0 %v759_v8 }
  0xb8   : > { %918 = vmatpush.msrb.mxu0 %v756_v12 }
  0xde   : > { %v507_v49 = vpop.f32.mrf.mxu0 }
  0xdf   : > { %v508_v51 = vadd.f32 %v507_v49, %v484_v42  ;;  %v755_v42 = vld [vmem:[#allocation10 + $0x330] sm:$0xff]  ;;  %v697_v49 = vld [vmem:[#allocation10 + $0x160] sm:$0xff] }
  0xe0   : > { %858 = vmatpush.msra.mxu1 %v755_v42 }
  0xe1   : > { %v527_v54 = vpop.f32.mrf.mxu1 }
  0xe2   : > { %v528_v55 = vadd.f32 %v527_v54, %v508_v51  ;;  %859 = vmatpush.msra.mxu1 %v752_v44  ;;  %v694_v51 = vld [vmem:[#allocation10 + $0x148] sm:$0xff]  ;;  %v727_v54 = vld [vmem:[#allocation10 + $0x250] sm:$0xff] }
  0xe4   : > { %v1657_v60 = vmax.f32 %v528_v55, 0.0  ;;  %860 = vmatpush.msra.mxu1 %v749_v46  ;;  %v688_v55 = vld [vmem:[#allocation10 + $0x118] sm:$0xff] }
  0xe6   : > { %821 = vmatmul.f32.vlgmr.msrb.gmra.mxu3 %v1657_v60  ;;  %v547_v0 = vpop.f32.mrf.mxu2  ;;  %925 = vmatpush.msrb.mxu1 %v700_v47 }
  0xe7   : > { %v548_v2 = vadd.f32 %v547_v0, %v485_v61  ;;  %965 = vmatpush.msrb.mxu3 %v796_v4  ;;  %v715_v61 = vld [vmem:[#allocation10 + $0x1f0] sm:$0xff]  ;;  %v682_v0 = vld [vmem:[#allocation10 + $0xe8] sm:$0xff] }
  0xe8   : > { %926 = vmatpush.msrb.mxu1 %v697_v49  ;;  %v679_v4 = vld [vmem:[#allocation10 + $0xd0] sm:$0xff] }
  0xe9   : > { %966 = vmatpush.msrb.mxu3 %v793_v7  ;;  %v763_v7 = vld [vmem:[#allocation10 + $0x370] sm:$0xff] }
  0xea   : > { %v567_v11 = vpop.f32.mrf.mxu3  ;;  %927 = vmatpush.msrb.mxu1 %v694_v51 }
  0xeb   : > { %v568_v13 = vadd.f32 %v567_v11, %v548_v2  ;;  %967 = vmatpush.msrb.mxu3 %v790_v10  ;;  %v766_v2 = vld [vmem:[#allocation10 + $0x388] sm:$0xff]  ;;  %v703_v10 = vld [vmem:[#allocation10 + $0x190] sm:$0xff]  ;;  %v760_v11 = vld [vmem:[#allocation10 + $0x358] sm:$0xff] }
  0xec   : > { %928 = vmatpush.msrb.mxu1 %v691_v53 }
  0xed   : > { %v1661_v16 = vmax.f32 %v568_v13, 0.0  ;;  %968 = vmatpush.msrb.mxu3 %v787_v15  ;;  %v673_v13 = vld [vmem:[#allocation10 + $0xa0] sm:$0xff] }
  0xee   : > { %929 = vmatpush.msrb.mxu1 %v688_v55  ;;  %v753_v15 = vld [vmem:[#allocation10 + $0x320] sm:$0xff] }
  0xef   : > { %841 = vmatmul.f32.vlgmr.msra.gmra.mxu0 %v1661_v16  ;;  %901 = vmatmul.f32.vlgmr.msra.gmra.mxu3 %v1661_v16 }
  0xf0   : > { %969 = vmatpush.msrb.mxu3 %v784_v19  ;;  %930 = vmatpush.msrb.mxu1 %v685_v57  ;;  %v750_v19 = vld [vmem:[#allocation10 + $0x308] sm:$0xff] }
  0xf1   : > { %919 = vmatpush.msrb.mxu0 %v753_v15 }
  0xf2   : > { %970 = vmatpush.msrb.mxu3 %v781_v22  ;;  %931 = vmatpush.msrb.mxu1 %v682_v0  ;;  %v664_v22 = vld [vmem:[#allocation10 + $0x58] sm:$0xff] }
  0xf3   : > { %920 = vmatpush.msrb.mxu0 %v750_v19 }
  0xf4   : > { %971 = vmatpush.msrb.mxu3 %v778_v26  ;;  %932 = vmatpush.msrb.mxu1 %v679_v4 }
  0xf6   : > { %972 = vmatpush.msrb.mxu3 %v775_v31  ;;  %933 = vmatpush.msrb.mxu1 %v676_v9 }
  0xf8   : > { %973 = vmatpush.msrb.mxu3 %v772_v35  ;;  %934 = vmatpush.msrb.mxu1 %v673_v13 }
  0xfa   : > { %v587_v29 = vpop.f32.mrf.mxu0  ;;  %974 = vmatpush.msrb.mxu3 %v769_v40  ;;  %935 = vmatpush.msrb.mxu1 %v670_v17  ;;  %v797_v40 = vld [vmem:[%s1716_s6] sm:$0x7] }
  0xfb   : > { %v607_v30 = vpop.f32.mrf.mxu1  ;;  %v588_v32 = vadd.f32 %v587_v29, %v486_v23  ;;  %v658_v23 = vld [vmem:[#allocation10 + $0x28] sm:$0xff]  ;;  %v364_v29 = vpop.xlane.xlu0 %363  ;;  %v799_v42 = vperm.slane %v797_v40, 0 }
  0xfc   : > { %975 = vmatpush.msrb.mxu3 %v766_v2  ;;  %936 = vmatpush.msrb.mxu1 %v667_v20 }
  0xfd   : > { %v608_v36 = vadd.f32 %v607_v30, %v588_v32  ;;  %v365_v30 = vmul.f32 0.03125, %v364_v29 }
  0xfe   : > { %976 = vmatpush.msrb.mxu3 %v763_v7  ;;  %937 = vmatpush.msrb.mxu1 %v664_v22 }
  0xff   : > { %648 = vmatmul.f32.vlgmr.msrb.gmra.mxu2 %v608_v36  ;;  %v370_v32 = vmul.f32 %v365_v30, %v365_v30  ;;  %v373_v51 = vsub.f32 %v1640_v5, %v365_v30 }
 0x100   : > { %945 = vmatpush.msrb.mxu2 %v748_v37  ;;  %977 = vmatpush.msrb.mxu3 %v760_v11 }
 0x102   : > { %946 = vmatpush.msrb.mxu2 %v745_v41  ;;  %978 = vmatpush.msrb.mxu3 %v757_v14 }
 0x103   : > { %v368_v31 = vpop.xlane.xlu0 %367 }
 0x104   : > { %947 = vmatpush.msrb.mxu2 %v742_v43  ;;  %979 = vmatpush.msrb.mxu3 %v754_v18  ;;  %v369_v33 = vmul.f32 0.03125, %v368_v31 }
 0x106   : > { %948 = vmatpush.msrb.mxu2 %v739_v45  ;;  %980 = vmatpush.msrb.mxu3 %v751_v21  ;;  %v371_v34 = vsub.f32 %v369_v33, %v370_v32 }
 0x107   : > { %881 = vmatmul.f32.vlgmr.msra.gmra.mxu2 %v1657_v60 }
 0x108   : > { %949 = vmatpush.msrb.mxu2 %v736_v48  ;;  %v372_v35 = vmax.f32 %v371_v34, 0.0  ;;  %v800_v48 = vperm.slane %v797_v40, 1 }
 0x10a   : > { %950 = vmatpush.msrb.mxu2 %v733_v50  ;;  %v374_v36 = vadd.f32 1e-05, %v372_v35 }
 0x10c   : > { %951 = vmatpush.msrb.mxu2 %v730_v52  ;;  %1227 = vrsqrt.f32 %v374_v36  ;;  %vm381_vm0 = vweird.f32 %v374_v36 }
 0x10e   : > { %952 = vmatpush.msrb.mxu2 %v727_v54 }
 0x110   : > { %953 = vmatpush.msrb.mxu2 %v724_v56  ;;  %v801_v56 = vperm.slane %v797_v40, 2 }
 0x112   : > { %954 = vmatpush.msrb.mxu2 %v721_v58  ;;  %v1228_v37 = vpop.eup %1227 }
 0x113   : > { %v376_v38 = vmul.f32 %v1228_v37, %v374_v36  ;;  %vm382_vm1 = vweird.f32 %v1228_v37 }
 0x114   : > { %955 = vmatpush.msrb.mxu2 %v718_v59  ;;  %vm383_vm2 = vmor %vm381_vm0, %vm382_vm1 }
 0x115   : > { %v377_v39 = vmul.f32 %v1228_v37, %v376_v38 }
 0x116   : > { %956 = vmatpush.msrb.mxu2 %v715_v61 }
 0x117   : > { %v378_v41 = vmul.f32 0.5, %v377_v39 }
 0x118   : > { %957 = vmatpush.msrb.mxu2 %v712_v62 }
 0x11a   : > { %958 = vmatpush.msrb.mxu2 %v709_v1 }
 0x11c   : > { %959 = vmatpush.msrb.mxu2 %v706_v6 }
 0x11e   : > { %960 = vmatpush.msrb.mxu2 %v703_v10 }
 0x11f   : > { %961 = vmatmul.f32.vlgmr.msrb.gmra.mxu2 %v1661_v16  ;;  %v661_v16 = vld [vmem:[#allocation10 + $0x40] sm:$0xff] }
 0x120   : > { %938 = vmatpush.msrb.mxu1 %v661_v16 }
 0x122   : > { %939 = vmatpush.msrb.mxu1 %v658_v23 }
 0x124   : > { %940 = vmatpush.msrb.mxu1 %v655_v24 }
 0x169   : > { %v822_v43 = vpop.f32.mrf.mxu3 }
 0x16a   : > { %v823_v44 = vadd.f32 %v822_v43, %v799_v42 }
 0x16c   : > { %v842_v45 = vpop.f32.mrf.mxu0 }
 0x16d   : > { %v843_v50 = vadd.f32 %v842_v45, %v823_v44 }
 0x172   : > { %v902_v52 = vpop.f32.mrf.mxu3 }
 0x182   : > { %v649_v26 = vpop.f32.mrf.mxu2 }
 0x183   : > { %v650_v27 = vadd.f32 %v1226_v25, %v649_v26 }
 0x185   : > { %v652_v28 = vmax.f32 %v650_v27, 0.0 }
 0x187   : > { %861 = vmatmul.f32.vlgmr.msra.gmra.mxu1 %v652_v28  ;;  %921 = vmatmul.f32.vlgmr.msrb.gmra.mxu0 %v652_v28 }
 0x188   : > { %981 = vmatmul.f32.vlgmr.msrb.gmra.mxu3 %v652_v28 }
 0x18a   : > { %v882_v49 = vpop.f32.mrf.mxu2 }
 0x18b   : > { %v883_v54 = vadd.f32 %v882_v49, %v800_v48 }
 0x18d   : > { %v903_v61 = vadd.f32 %v902_v52, %v883_v54 }
 0x18f   : > { %941 = vmatmul.f32.vlgmr.msrb.gmra.mxu1 %v1657_v60  ;;  %v379_v60 = vsub.f32 1.5, %v378_v41 }
 0x191   : > { %v380_v46 = vmul.f32 %v1228_v37, %v379_v60 }
 0x193   : > { %v384_v53 = vsel %vm383_vm2, %v1228_v37, %v380_v46 }
 0x194   : > { %v385_v57 = vmul.f32 %v384_v53, %v373_v51 }
 0x1a2   : > { %v962_v0 = vpop.f32.mrf.mxu2 }
 0x204   : > { %v862_v47 = vpop.f32.mrf.mxu1  ;;  %v922_v58 = vpop.f32.mrf.mxu0 }
 0x205   : > { %v863_v55 = vadd.f32 %v862_v47, %v843_v50  ;;  %v923_v5 = vadd.f32 %v922_v58, %v903_v61 }
 0x207   : > { %v985_v62 = vmul.f32 %v863_v55, %v385_v57 }
 0x209   : > { %v986_v3 = vadd.f32 %v985_v62, %v923_v5 }
 0x20b   : > { %v982_v2 = vpop.f32.mrf.mxu3 }
 0x20c   : > { %v942_v59 = vpop.f32.mrf.mxu1 }
 0x20d   : > { %v943_v63 = vadd.f32 %v942_v59, %v801_v56 }
 0x20f   : > { %v963_v1 = vadd.f32 %v962_v0, %v943_v63 }
 0x211   : > { %v983_v4 = vadd.f32 %v982_v2, %v963_v1 }
 0x213   : > { %v987_v6 = vadd.f32 %v986_v3, %v983_v4 }
 0x215   : > { %988 = vst [vmem:[%s360_s10] sm:$0xff] %v987_v6 }
 0x216   : > { %1406 = shalt.err (!%p1403_p9)
}
 0x217   : > { %1153 = dma.vmem_to_hbm [thread:$0]  (%p1590_p4), %s1003_s11, 128, %s1005_s23, %s990_s8  }
 0x218 PF: > { %s1016_s18 = sand.u32 1, %s1441_s24   ;;  %p1729_p10 = scmp.ge.s32.totalorder %s1453_s27, 2 }
 0x219   : > { %s1017_s14 = scalar_lea.sflag [#allocation4], %s1016_s18 }
 0x21a   : > { %p1173_p13 = pnand %p1729_p10, %p1594_p6 }
 0x21c   : > { %p1174_p11 = pneg %p1173_p13 }
 0x21e   : > { %1436 = dma.done.wait (%p1174_p11), %s1017_s14, 128  }
 0x21f   : > { %1438 = vsyncadd (%p1174_p11), %s1017_s14, 4294967168  ;;  %p22_p0 = scmp.ge.s32.totalorder %s1564_s17, 4   ;;  %s1730_s24 = smov %s1445_s25 }
 0x220   : > { %s1731_s25 = smov %s1449_s26  ;;  %s1732_s26 = smov %s1575_s22 }
 0x221   : > { %s1733_s27 = smov %s1564_s17  ;;  %24 = sbr.rel (!%p22_p0) target bundleno = 10 (0xa), region = 109 }
 0x226   :  { %1023 = vsyncpa [#allocation3], 1 }
 0x227   :  { %1025 = vsyncpa [#allocation3 + $0x1], 1 }
 0x228   :  { %1026 = vsyncpa [#allocation6], 1 }
 0x229   :  { %1027 = vsyncpa [#allocation9], 1 }
 0x22a   :  { %1028 = vsyncpa [#allocation4], 1 }
 0x22b   :  { %1030 = vsyncpa [#allocation4 + $0x1], 1 }

</bundles_post_ra>
